<compile_context>
chip_gen: v7x
topology: tpu7x:2x2x1
jax: 0.10.0
libtpu: 0.0.40
codegen_flags: <defaults>
</compile_context>

<pallas_src>
import jax
import jax.numpy as jnp
from jax.experimental import pallas as pl
from jax.experimental.pallas import tpu as pltpu

# Chunk the Pallas DMA copy only when the tensor is large enough that
# multiple outstanding DMAs actually help (tens of MiB+).
_CHUNK_THRESHOLD_BYTES = 32 * 1024 * 1024
_MAX_CHUNKS = 8


def transformer_forward(x):
    """Identity forward pass of the reference `Transformer` module.

    The reference op is a pure pass-through, so the fastest correct
    implementation is to return the input unchanged: zero HBM traffic and
    zero kernel launches on every TPU generation.  Intentionally NOT jitted
    here so it inlines into the caller's jit as pure plumbing.
    """
    return x


def _make_dma_copy_kernel(n_chunks, chunk_rows):
    """Build an HBM->HBM DMA copy kernel with `n_chunks` outstanding DMAs."""
    if n_chunks == 1:
        def kernel(x_hbm_ref, o_hbm_ref, sem):
            # Single whole-array HBM -> HBM DMA.  No grid, no VMEM staging,
            # no TensorCore bundles: the DMA engine streams at HBM roofline.
            cp = pltpu.make_async_copy(x_hbm_ref, o_hbm_ref, sem)
            cp.start()
            cp.wait()
        return kernel

    def kernel(x_hbm_ref, o_hbm_ref, sems):
        # Start all chunk DMAs first (multiple outstanding descriptors hide
        # per-descriptor issue latency and can use multiple DMA queues),
        # then wait on all of them.
        copies = []
        for c in range(n_chunks):
            start = c * chunk_rows
            cp = pltpu.make_async_copy(
                x_hbm_ref.at[pl.ds(start, chunk_rows)],
                o_hbm_ref.at[pl.ds(start, chunk_rows)],
                sems.at[c],
            )
            cp.start()
            copies.append(cp)
        for cp in copies:
            cp.wait()

    return kernel


def _pallas_dma_copy(x):
    """Opt-in Pallas HBM->HBM DMA copy producing a fresh output buffer."""
    nbytes = x.size * jnp.dtype(x.dtype).itemsize

    # Decide chunking at trace time (shapes are static).
    n_chunks = 1
    chunk_rows = 0
    if x.ndim >= 1 and nbytes >= _CHUNK_THRESHOLD_BYTES:
        lead = x.shape[0]
        for cand in range(min(_MAX_CHUNKS, lead), 1, -1):
            if lead % cand == 0:
                n_chunks = cand
                chunk_rows = lead // cand
                break

    sem_shape = () if n_chunks == 1 else (n_chunks,)

    return pl.pallas_call(
        _make_dma_copy_kernel(n_chunks, chunk_rows),
        out_shape=jax.ShapeDtypeStruct(x.shape, x.dtype),
        in_specs=[pl.BlockSpec(memory_space=pl.ANY)],
        out_specs=pl.BlockSpec(memory_space=pl.ANY),
        scratch_shapes=[pltpu.SemaphoreType.DMA(sem_shape)],
        cost_estimate=pl.CostEstimate(
            flops=0,
            transcendentals=0,
            bytes_accessed=2 * nbytes,  # read + write, unchanged by chunking
        ),
    )(x)


def transformer_forward_copy(x, use_pallas=False):
    """Identity forward pass that materializes a fresh output buffer.

    Only use this when buffer semantics require `out is not x`.  If the goal
    is merely to let the caller free/donate `x`, prefer jit donation
    (donate_argnums) or input_output_aliases -- zero bytes moved beats any
    roofline-bound copy.

    Default path is a native XLA copy (single DMA at HBM roofline, no Mosaic
    custom-call overhead, eligible for scheduler elision/fusion).  Set
    `use_pallas=True` to route through the Pallas HBM->HBM DMA kernel
    (chunked for large tensors).
    """
    if use_pallas:
        return _pallas_dma_copy(x)
    return jnp.copy(x)


if __name__ == "__main__":
    key = jax.random.PRNGKey(0)
    # Small deterministic input consistent with an image-like NCHW tensor.
    x = jax.random.normal(key, (2, 4, 16, 16), dtype=jnp.float32)

    # Recommended path: pure identity (zero bytes, zero launches).
    y_fast = transformer_forward(x)
    y_fast = jax.block_until_ready(y_fast)

    # Default copy path: native XLA copy.
    y_copy = transformer_forward_copy(x)
    y_copy = jax.block_until_ready(y_copy)

    # Opt-in Pallas path: single HBM->HBM DMA (small tensor -> no chunking).
    y_pallas = transformer_forward_copy(x, use_pallas=True)
    y_pallas = jax.block_until_ready(y_pallas)

    # Semantics check: forward(x) == x exactly, for all paths.
    for y in (y_fast, y_copy, y_pallas):
        assert y.shape == x.shape and y.dtype == x.dtype
        assert bool(jnp.all(y == x))

    print("KERNEL_OK")
</pallas_src>

<mosaic_0001>
module attributes {stable_mosaic.version = 11 : i64} {
  func.func @kernel(%arg0: memref<2x4x16x16xf32, #tpu.memory_space<any>>, %arg1: memref<2x4x16x16xf32, #tpu.memory_space<any>>, %arg2: memref<!tpu.dma_semaphore, #tpu.memory_space<semaphore_mem>>) attributes {dimension_semantics = [], scalar_prefetch = 0 : i64, scratch_operands = 1 : i64, tpu.core_type = #tpu.core_type<tc>} {
    tpu.enqueue_dma source(%arg0 : memref<2x4x16x16xf32, #tpu.memory_space<any>>) target(%arg1 : memref<2x4x16x16xf32, #tpu.memory_space<any>>) target_semaphore(%arg2 : memref<!tpu.dma_semaphore, #tpu.memory_space<semaphore_mem>>)
    tpu.wait_dma2 semaphore(%arg2 : memref<!tpu.dma_semaphore, #tpu.memory_space<semaphore_mem>>) src(%arg0 : memref<2x4x16x16xf32, #tpu.memory_space<any>>) dst(%arg1 : memref<2x4x16x16xf32, #tpu.memory_space<any>>)
    return
  }
}

</mosaic_0001>

<bundles_post_ra>
// kernel: tpu_custom_call.1
= control target key start
LH: loop header
LB: loop body
LE: loop exit
PB: predicated region body
PF: predicated region fallthrough
CT: control target
= control target key end

     0   :  { %s36_s6 = smov [#allocation2]   ;;  %s37_s7 = smov [#allocation3]   ;;  %s55_s0 = inlined_call_operand.hbm [shape: f32[2,4,16,16], index: 0, kind: input, shape index: {}]   ;;  %s56_s1 = inlined_call_operand.hbm [shape: f32[2,4,16,16], index: 1, kind: output, shape index: {}]  }
   0x1   :  { %s38_s8 = smov 0  }
   0x2   :  { %18 = dma.general %s55_s0, 2048, %s56_s1, %s36_s6, %s37_s7, [#allocation4], %s38_s8, 0  }
   0x3   :  { %34 = dma.done.wait [#allocation2], 2048 }
   0x4   :  { %35 = vsyncadd [#allocation2], 4294965248 }
   0x5   :  { %24 = vsyncmov [#allocation2] }
   0x8   :  { %s25_s13 = vpop.sfrf %24 }
   0x9   :  { %p30_p0 = scmp.ne.s32.totalorder %s25_s13, 0 }
   0xb   :  { %29 = shalt.err (%p30_p0)  }

</bundles_post_ra>
